<compile_context>
chip_gen: v6e
topology: v6e:2x2x1
jax: 0.10.0
libtpu: 0.0.40
codegen_flags: <defaults>
</compile_context>

<pallas_src>
import jax
import jax.numpy as jnp
from jax.experimental import pallas as pl
from jax.experimental.pallas import tpu as pltpu


def _round_up(x, m):
    return ((x + m - 1) // m) * m


def _softplus(x):
    # Matches torch.nn.functional.softplus (beta=1, threshold=20).
    return jnp.where(x > 20.0, x, jnp.log1p(jnp.exp(jnp.minimum(x, 20.0))))


def _pack_factor(out_size):
    """Choose (R, chunk, PK): R batch rows packed per PK-lane output row."""
    if out_size > 64:
        pk = _round_up(out_size, 128)
        return 1, pk, pk                     # no packing possible; lane-dense pad
    chunk = 8
    while chunk < out_size:
        chunk *= 2
    return 128 // chunk, chunk, 128


# ----------------------------------------------------------------------------
# Kernel
# ----------------------------------------------------------------------------
def maml_kernel(x_ref,                      # (TILE_B, IN)       f32
                wi_ref, ti_ref,             # (IN, H) bf16, (1, H) f32   (BN folded)
                wh_ref, th_ref,             # (L, H, H) bf16, (L, 1, H) f32
                wo_ref, bo_ref,             # (R, H, PK) bf16, (1, PK) f32 (lane-shifted)
                out_ref):                   # (TILE_B // R, PK)  f32
    # input_layer -> folded BN -> ReLU   (dropout = identity in eval mode)
    x = x_ref[...].astype(jnp.bfloat16)
    h = jnp.dot(x, wi_ref[...], preferred_element_type=jnp.float32) + ti_ref[...]
    h = jnp.maximum(h, 0.0)

    # residual hidden blocks (identity.shape == x.shape always holds: Linear(H, H))
    # Unrolled: num_hidden is small (default 2).
    for l in range(wh_ref.shape[0]):
        z = jnp.dot(h.astype(jnp.bfloat16), wh_ref[l],
                    preferred_element_type=jnp.float32) + th_ref[l]
        h = jnp.maximum(z, 0.0) + h

    # output_layer, lane-packed: contiguous row-chunk c of this tile goes to lane
    # group c via a weight matrix whose real columns sit at lanes [c*chunk, ...).
    # Pure matmuls + f32 adds -> no reshapes / lane shuffles; the other groups'
    # lanes receive exact zeros from the zero-padded weights.
    R = wo_ref.shape[0]
    rows = out_ref.shape[0]                 # TILE_B // R, sublane-aligned
    hb = h.astype(jnp.bfloat16)
    acc = jnp.dot(hb[:rows], wo_ref[0], preferred_element_type=jnp.float32)
    for c in range(1, R):
        acc = acc + jnp.dot(hb[c * rows:(c + 1) * rows], wo_ref[c],
                            preferred_element_type=jnp.float32)
    o = acc + bo_ref[...]

    # softplus on the dense packed slab (R x fewer EUP pushes), unmasked store.
    out_ref[...] = _softplus(o).astype(out_ref.dtype)


# ----------------------------------------------------------------------------
# Wrapper
# ----------------------------------------------------------------------------
def maml_forward(x, folded_params, *, tile_b=4096):
    """Runs the fused forward. x: (B, input_size) f32. Returns (B, output_size) f32."""
    wi_f, ti_f, wh_f, th_f, wo_pack, bo_pack, meta = folded_params
    out_size, R, chunk, PK = meta["out_size"], meta["R"], meta["chunk"], meta["PK"]
    B, in_size = x.shape
    H = wi_f.shape[1]
    L = wh_f.shape[0]

    # --- batch tile selection ------------------------------------------------
    unit = 8 * R                              # packed-out rows must stay 8-sublane aligned
    tile_b = int(min(max(int(tile_b), unit), 8192))          # 8192 hard cap (v7x VMEM)
    tile_b = _round_up(min(tile_b, max(B, 1)), unit)
    if B > unit:
        # guarantee >=2 grid steps so v7x's 2 TensorCores both get work
        tile_b = min(tile_b, _round_up(-(-B // 2), unit))
    tile_b = max(tile_b, unit)
    b_pad = _round_up(B, tile_b)
    if b_pad != B:
        x = jnp.pad(x, ((0, b_pad - B), (0, 0)))
    grid = (b_pad // tile_b,)

    # --- VMEM limit sized from the actual footprint (clamped to [32, 48] MiB) -
    lane = 128
    x_bytes = tile_b * _round_up(in_size, lane) * 4
    out_bytes = (tile_b // R) * PK * 4
    tmp_bytes = 3 * tile_b * _round_up(H, lane) * 4           # h / z f32 temporaries
    w_bytes = ((wi_f.size + wh_f.size + wo_pack.size) * 2
               + (ti_f.size + th_f.size + bo_pack.size) * 4)
    vmem_limit = int(min(48 * 1024 * 1024,
                         max(32 * 1024 * 1024,
                             2 * (2 * (x_bytes + out_bytes) + tmp_bytes + 2 * w_bytes))))

    # --- advisory cost estimate ----------------------------------------------
    flops = 2 * b_pad * (in_size * H + L * H * H + H * PK)
    transcendentals = 2 * (b_pad // R) * PK                   # exp + log1p (packed)
    bytes_accessed = (x.size * x.dtype.itemsize
                      + (wi_f.size + wh_f.size + wo_pack.size) * 2
                      + (ti_f.size + th_f.size + bo_pack.size) * 4
                      + (b_pad // R) * PK * 4)
    cost = pl.CostEstimate(flops=flops, transcendentals=transcendentals,
                           bytes_accessed=bytes_accessed)

    out_packed = pl.pallas_call(
        maml_kernel,
        out_shape=jax.ShapeDtypeStruct((b_pad // R, PK), jnp.float32),
        grid=grid,
        in_specs=[
            # batch-tiled activations
            pl.BlockSpec((tile_b, in_size), lambda i: (i, 0)),
            # weights / shifts: constant index_map -> VMEM-resident across grid
            pl.BlockSpec((in_size, H), lambda i: (0, 0)),
            pl.BlockSpec((1, H), lambda i: (0, 0)),
            pl.BlockSpec((L, H, H), lambda i: (0, 0, 0)),
            pl.BlockSpec((L, 1, H), lambda i: (0, 0, 0)),
            pl.BlockSpec((R, H, PK), lambda i: (0, 0, 0)),
            pl.BlockSpec((1, PK), lambda i: (0, 0)),
        ],
        out_specs=pl.BlockSpec((tile_b // R, PK), lambda i: (i, 0)),
        compiler_params=pltpu.CompilerParams(
            dimension_semantics=("parallel",),     # v7x: shard batch over 2 TCs
            vmem_limit_bytes=vmem_limit,
        ),
        cost_estimate=cost,
    )(x, wi_f, ti_f, wh_f, th_f, wo_pack, bo_pack)

    # --- unpack: within tile i, lane group c holds the tile's c-th contiguous
    # chunk of tile_b//R batch rows.  Tiny slab -> cheap wrapper-side ops.
    num_tiles = b_pad // tile_b
    rows_per_tile = tile_b // R
    out = out_packed.reshape(num_tiles, rows_per_tile, R, chunk)
    out = out.transpose(0, 2, 1, 3).reshape(b_pad, chunk)
    return out[:B, :out_size]


# ----------------------------------------------------------------------------
# Parameter construction (matches MAMLModel.__init__) + BN/bf16/pack folding
# ----------------------------------------------------------------------------
def init_params(key, input_size, output_size, hidden_size=128, num_layers=3):
    """kaiming_normal (fan_in, relu) weights, zero biases, fresh BN stats."""
    eps = 1e-5
    n_hidden = num_layers - 1
    assert n_hidden >= 1
    keys = jax.random.split(key, 2 + n_hidden)

    def kaiming(k_, fan_in, fan_out):
        std = (2.0 / fan_in) ** 0.5
        # stored as (in, out) == transpose of PyTorch's (out, in) layout
        return std * jax.random.normal(k_, (fan_in, fan_out), dtype=jnp.float32)

    # Eval-mode BN fold: scale = gamma/sqrt(var+eps), shift = beta - mean*scale
    # (gamma=1, beta=0, running_mean=0, running_var=1 at init)
    bn_scale = jnp.full((hidden_size,), 1.0 / (1.0 + eps) ** 0.5, jnp.float32)
    bn_shift = jnp.zeros((hidden_size,), jnp.float32)

    params = dict(
        wi=kaiming(keys[0], input_size, hidden_size),
        bi=jnp.zeros((hidden_size,), jnp.float32),
        wh=[kaiming(keys[1 + i], hidden_size, hidden_size) for i in range(n_hidden)],
        bh=[jnp.zeros((hidden_size,), jnp.float32) for _ in range(n_hidden)],
        wo=kaiming(keys[1 + n_hidden], hidden_size, output_size),
        bo=jnp.zeros((output_size,), jnp.float32),
        bn_scale_in=bn_scale, bn_shift_in=bn_shift,
        bn_scale_h=[bn_scale] * n_hidden, bn_shift_h=[bn_shift] * n_hidden,
    )
    return params


def prepare_params(params):
    """Fold BN into weights, cast MXU operands to bf16, build lane-packed head."""
    wi_f = (params["wi"] * params["bn_scale_in"][None, :]).astype(jnp.bfloat16)
    ti_f = (params["bi"] * params["bn_scale_in"]
            + params["bn_shift_in"])[None, :].astype(jnp.float32)

    wh_f = jnp.stack([w * s[None, :]
                      for w, s in zip(params["wh"], params["bn_scale_h"])]
                     ).astype(jnp.bfloat16)
    th_f = jnp.stack([(b * s + t)[None, :]
                      for b, s, t in zip(params["bh"], params["bn_scale_h"],
                                         params["bn_shift_h"])]
                     ).astype(jnp.float32)

    hidden_size, out_size = params["wo"].shape
    R, chunk, PK = _pack_factor(out_size)
    # R lane-shifted copies of the output weight: copy c places the real columns
    # at lanes [c*chunk, c*chunk+out_size); everything else is exactly zero.
    wo_pack = jnp.zeros((R, hidden_size, PK), jnp.float32)
    bo_pack = jnp.zeros((1, PK), jnp.float32)
    for c in range(R):
        wo_pack = wo_pack.at[c, :, c * chunk:c * chunk + out_size].set(params["wo"])
        bo_pack = bo_pack.at[0, c * chunk:c * chunk + out_size].set(params["bo"])
    wo_pack = wo_pack.astype(jnp.bfloat16)

    meta = dict(out_size=out_size, R=R, chunk=chunk, PK=PK)
    return (wi_f, ti_f, wh_f, th_f, wo_pack, bo_pack, meta)


# ----------------------------------------------------------------------------
# Pure-JAX references for validation
# ----------------------------------------------------------------------------
def reference_forward_f32(x, params):
    """f32 eval-mode PyTorch forward (BN via running stats, dropout identity)."""
    s_in, t_in = params["bn_scale_in"], params["bn_shift_in"]
    h = jnp.maximum((x @ params["wi"] + params["bi"]) * s_in + t_in, 0.0)
    for w, b, s, t in zip(params["wh"], params["bh"],
                          params["bn_scale_h"], params["bn_shift_h"]):
        z = jnp.maximum((h @ w + b) * s + t, 0.0)
        h = z + h
    return _softplus(h @ params["wo"] + params["bo"])


def reference_forward_bf16(x, params):
    """Mirrors the kernel's bf16-operand / f32-accumulate arithmetic exactly
    (the lane packing only adds exact zeros, so the unpacked form matches)."""
    s_in, t_in = params["bn_scale_in"], params["bn_shift_in"]
    wi = (params["wi"] * s_in[None, :]).astype(jnp.bfloat16)
    ti = params["bi"] * s_in + t_in
    h = jnp.dot(x.astype(jnp.bfloat16), wi, preferred_element_type=jnp.float32) + ti
    h = jnp.maximum(h, 0.0)
    for w, b, s, t in zip(params["wh"], params["bh"],
                          params["bn_scale_h"], params["bn_shift_h"]):
        wf = (w * s[None, :]).astype(jnp.bfloat16)
        tf = b * s + t
        z = jnp.dot(h.astype(jnp.bfloat16), wf,
                    preferred_element_type=jnp.float32) + tf
        h = jnp.maximum(z, 0.0) + h
    o = jnp.dot(h.astype(jnp.bfloat16), params["wo"].astype(jnp.bfloat16),
                preferred_element_type=jnp.float32) + params["bo"]
    return _softplus(o)


# ----------------------------------------------------------------------------
if __name__ == "__main__":
    INPUT_SIZE, OUTPUT_SIZE, HIDDEN, NUM_LAYERS = 32, 16, 128, 3
    BATCH = 200  # not a multiple of the tile: exercises padding, 2-step grid, packing

    key = jax.random.PRNGKey(0)
    kx, kp = jax.random.split(key)
    x = jax.random.normal(kx, (BATCH, INPUT_SIZE), dtype=jnp.float32)

    params = init_params(kp, INPUT_SIZE, OUTPUT_SIZE, HIDDEN, NUM_LAYERS)
    folded = prepare_params(params)

    # Default tile_b=4096 gets clamped to 128 here (>=2 grid steps, 8*R aligned).
    out = jax.block_until_ready(maml_forward(x, folded))
    assert out.shape == (BATCH, OUTPUT_SIZE)

    # Tight check against a reference that reproduces the kernel arithmetic.
    ref_bf16 = reference_forward_bf16(x, params)
    assert jnp.allclose(out, ref_bf16, atol=2e-3, rtol=2e-3)

    # Loose sanity check against the full-f32 eval-mode forward
    # (bf16 MXU operands => ~1e-2 relative deviation is expected).
    ref_f32 = reference_forward_f32(x, params)
    assert jnp.allclose(out, ref_f32, atol=5e-2, rtol=5e-2)

    print("KERNEL_OK")
</pallas_src>

<mosaic_0001>
module attributes {stable_mosaic.version = 11 : i64} {
  func.func @maml_kernel(%arg0: i32, %arg1: memref<128x32xf32, #tpu.memory_space<vmem>>, %arg2: memref<32x128xbf16, #tpu.memory_space<vmem>>, %arg3: memref<1x128xf32, #tpu.memory_space<vmem>>, %arg4: memref<2x128x128xbf16, #tpu.memory_space<vmem>>, %arg5: memref<2x1x128xf32, #tpu.memory_space<vmem>>, %arg6: memref<8x128x128xbf16, #tpu.memory_space<vmem>>, %arg7: memref<1x128xf32, #tpu.memory_space<vmem>>, %arg8: memref<16x128xf32, #tpu.memory_space<vmem>>) attributes {dimension_semantics = [#tpu.dimension_semantics<parallel>], iteration_bounds = array<i64: 2>, scalar_prefetch = 0 : i64, scratch_operands = 0 : i64, tpu.core_type = #tpu.core_type<tc>, window_params = [{transform_indices = @transform_0, window_bounds = array<i64: 128, 32>}, {pipeline_mode = #tpu.pipeline_mode<synchronous>, transform_indices = @transform_1, window_bounds = array<i64: 32, 128>}, {pipeline_mode = #tpu.pipeline_mode<synchronous>, transform_indices = @transform_2, window_bounds = array<i64: 1, 128>}, {pipeline_mode = #tpu.pipeline_mode<synchronous>, transform_indices = @transform_3, window_bounds = array<i64: 2, 128, 128>}, {pipeline_mode = #tpu.pipeline_mode<synchronous>, transform_indices = @transform_4, window_bounds = array<i64: 2, 1, 128>}, {pipeline_mode = #tpu.pipeline_mode<synchronous>, transform_indices = @transform_5, window_bounds = array<i64: 8, 128, 128>}, {pipeline_mode = #tpu.pipeline_mode<synchronous>, transform_indices = @transform_6, window_bounds = array<i64: 1, 128>}, {transform_indices = @transform_7, window_bounds = array<i64: 16, 128>}]} {
    %c0 = arith.constant 0 : index
    %c0_0 = arith.constant 0 : index
    %0 = vector.load %arg1[%c0, %c0_0] : memref<128x32xf32, #tpu.memory_space<vmem>>, vector<128x32xf32>
    %1 = arith.truncf %0 : vector<128x32xf32> to vector<128x32xbf16>
    %c0_1 = arith.constant 0 : index
    %c0_2 = arith.constant 0 : index
    %2 = vector.load %arg2[%c0_1, %c0_2] : memref<32x128xbf16, #tpu.memory_space<vmem>>, vector<32x128xbf16>
    %cst = arith.constant dense<0.000000e+00> : vector<128x128xf32>
    %3 = tpu.matmul %1, %2, %cst {dimension_numbers = #tpu.dot_dimension_numbers<[1], [0], [0], [1], [0, 0, 1, 1], [], []>} : vector<128x32xbf16>, vector<32x128xbf16>, vector<128x128xf32> -> vector<128x128xf32>
    %c0_3 = arith.constant 0 : index
    %c0_4 = arith.constant 0 : index
    %4 = vector.load %arg3[%c0_3, %c0_4] : memref<1x128xf32, #tpu.memory_space<vmem>>, vector<1x128xf32>
    %5 = vector.broadcast %4 : vector<1x128xf32> to vector<128x128xf32>
    %6 = arith.addf %3, %5 : vector<128x128xf32>
    %cst_5 = arith.constant 0.000000e+00 : f32
    %7 = vector.broadcast %cst_5 : f32 to vector<128x128xf32>
    %8 = arith.maximumf %6, %7 : vector<128x128xf32>
    %9 = arith.truncf %8 : vector<128x128xf32> to vector<128x128xbf16>
    %c0_6 = arith.constant 0 : index
    %c0_7 = arith.constant 0 : index
    %c0_8 = arith.constant 0 : index
    %10 = vector.load %arg4[%c0_6, %c0_7, %c0_8] : memref<2x128x128xbf16, #tpu.memory_space<vmem>>, vector<1x128x128xbf16>
    %11 = vector.shape_cast %10 : vector<1x128x128xbf16> to vector<128x128xbf16>
    %cst_9 = arith.constant dense<0.000000e+00> : vector<128x128xf32>
    %12 = tpu.matmul %9, %11, %cst_9 {dimension_numbers = #tpu.dot_dimension_numbers<[1], [0], [0], [1], [0, 0, 1, 1], [], []>} : vector<128x128xbf16>, vector<128x128xbf16>, vector<128x128xf32> -> vector<128x128xf32>
    %c0_10 = arith.constant 0 : index
    %c0_11 = arith.constant 0 : index
    %c0_12 = arith.constant 0 : index
    %13 = vector.load %arg5[%c0_10, %c0_11, %c0_12] : memref<2x1x128xf32, #tpu.memory_space<vmem>>, vector<1x1x128xf32>
    %14 = vector.shape_cast %13 : vector<1x1x128xf32> to vector<1x128xf32>
    %15 = vector.broadcast %14 : vector<1x128xf32> to vector<128x128xf32>
    %16 = arith.addf %12, %15 : vector<128x128xf32>
    %cst_13 = arith.constant 0.000000e+00 : f32
    %17 = vector.broadcast %cst_13 : f32 to vector<128x128xf32>
    %18 = arith.maximumf %16, %17 : vector<128x128xf32>
    %19 = arith.addf %18, %8 : vector<128x128xf32>
    %20 = arith.truncf %19 : vector<128x128xf32> to vector<128x128xbf16>
    %c1 = arith.constant 1 : index
    %c0_14 = arith.constant 0 : index
    %c0_15 = arith.constant 0 : index
    %21 = vector.load %arg4[%c1, %c0_14, %c0_15] : memref<2x128x128xbf16, #tpu.memory_space<vmem>>, vector<1x128x128xbf16>
    %22 = vector.shape_cast %21 : vector<1x128x128xbf16> to vector<128x128xbf16>
    %cst_16 = arith.constant dense<0.000000e+00> : vector<128x128xf32>
    %23 = tpu.matmul %20, %22, %cst_16 {dimension_numbers = #tpu.dot_dimension_numbers<[1], [0], [0], [1], [0, 0, 1, 1], [], []>} : vector<128x128xbf16>, vector<128x128xbf16>, vector<128x128xf32> -> vector<128x128xf32>
    %c1_17 = arith.constant 1 : index
    %c0_18 = arith.constant 0 : index
    %c0_19 = arith.constant 0 : index
    %24 = vector.load %arg5[%c1_17, %c0_18, %c0_19] : memref<2x1x128xf32, #tpu.memory_space<vmem>>, vector<1x1x128xf32>
    %25 = vector.shape_cast %24 : vector<1x1x128xf32> to vector<1x128xf32>
    %26 = vector.broadcast %25 : vector<1x128xf32> to vector<128x128xf32>
    %27 = arith.addf %23, %26 : vector<128x128xf32>
    %cst_20 = arith.constant 0.000000e+00 : f32
    %28 = vector.broadcast %cst_20 : f32 to vector<128x128xf32>
    %29 = arith.maximumf %27, %28 : vector<128x128xf32>
    %30 = arith.addf %29, %19 : vector<128x128xf32>
    %31 = arith.truncf %30 : vector<128x128xf32> to vector<128x128xbf16>
    %32 = vector.extract_strided_slice %31 {offsets = [0, 0], sizes = [16, 128], strides = [1, 1]} : vector<128x128xbf16> to vector<16x128xbf16>
    %c0_21 = arith.constant 0 : index
    %c0_22 = arith.constant 0 : index
    %c0_23 = arith.constant 0 : index
    %33 = vector.load %arg6[%c0_21, %c0_22, %c0_23] : memref<8x128x128xbf16, #tpu.memory_space<vmem>>, vector<1x128x128xbf16>
    %34 = vector.shape_cast %33 : vector<1x128x128xbf16> to vector<128x128xbf16>
    %cst_24 = arith.constant dense<0.000000e+00> : vector<16x128xf32>
    %35 = tpu.matmul %32, %34, %cst_24 {dimension_numbers = #tpu.dot_dimension_numbers<[1], [0], [0], [1], [0, 0, 1, 1], [], []>} : vector<16x128xbf16>, vector<128x128xbf16>, vector<16x128xf32> -> vector<16x128xf32>
    %36 = vector.extract_strided_slice %31 {offsets = [16, 0], sizes = [16, 128], strides = [1, 1]} : vector<128x128xbf16> to vector<16x128xbf16>
    %c1_25 = arith.constant 1 : index
    %c0_26 = arith.constant 0 : index
    %c0_27 = arith.constant 0 : index
    %37 = vector.load %arg6[%c1_25, %c0_26, %c0_27] : memref<8x128x128xbf16, #tpu.memory_space<vmem>>, vector<1x128x128xbf16>
    %38 = vector.shape_cast %37 : vector<1x128x128xbf16> to vector<128x128xbf16>
    %cst_28 = arith.constant dense<0.000000e+00> : vector<16x128xf32>
    %39 = tpu.matmul %36, %38, %cst_28 {dimension_numbers = #tpu.dot_dimension_numbers<[1], [0], [0], [1], [0, 0, 1, 1], [], []>} : vector<16x128xbf16>, vector<128x128xbf16>, vector<16x128xf32> -> vector<16x128xf32>
    %40 = arith.addf %35, %39 : vector<16x128xf32>
    %41 = vector.extract_strided_slice %31 {offsets = [32, 0], sizes = [16, 128], strides = [1, 1]} : vector<128x128xbf16> to vector<16x128xbf16>
    %c2 = arith.constant 2 : index
    %c0_29 = arith.constant 0 : index
    %c0_30 = arith.constant 0 : index
    %42 = vector.load %arg6[%c2, %c0_29, %c0_30] : memref<8x128x128xbf16, #tpu.memory_space<vmem>>, vector<1x128x128xbf16>
    %43 = vector.shape_cast %42 : vector<1x128x128xbf16> to vector<128x128xbf16>
    %cst_31 = arith.constant dense<0.000000e+00> : vector<16x128xf32>
    %44 = tpu.matmul %41, %43, %cst_31 {dimension_numbers = #tpu.dot_dimension_numbers<[1], [0], [0], [1], [0, 0, 1, 1], [], []>} : vector<16x128xbf16>, vector<128x128xbf16>, vector<16x128xf32> -> vector<16x128xf32>
    %45 = arith.addf %40, %44 : vector<16x128xf32>
    %46 = vector.extract_strided_slice %31 {offsets = [48, 0], sizes = [16, 128], strides = [1, 1]} : vector<128x128xbf16> to vector<16x128xbf16>
    %c3 = arith.constant 3 : index
    %c0_32 = arith.constant 0 : index
    %c0_33 = arith.constant 0 : index
    %47 = vector.load %arg6[%c3, %c0_32, %c0_33] : memref<8x128x128xbf16, #tpu.memory_space<vmem>>, vector<1x128x128xbf16>
    %48 = vector.shape_cast %47 : vector<1x128x128xbf16> to vector<128x128xbf16>
    %cst_34 = arith.constant dense<0.000000e+00> : vector<16x128xf32>
    %49 = tpu.matmul %46, %48, %cst_34 {dimension_numbers = #tpu.dot_dimension_numbers<[1], [0], [0], [1], [0, 0, 1, 1], [], []>} : vector<16x128xbf16>, vector<128x128xbf16>, vector<16x128xf32> -> vector<16x128xf32>
    %50 = arith.addf %45, %49 : vector<16x128xf32>
    %51 = vector.extract_strided_slice %31 {offsets = [64, 0], sizes = [16, 128], strides = [1, 1]} : vector<128x128xbf16> to vector<16x128xbf16>
    %c4 = arith.constant 4 : index
    %c0_35 = arith.constant 0 : index
    %c0_36 = arith.constant 0 : index
    %52 = vector.load %arg6[%c4, %c0_35, %c0_36] : memref<8x128x128xbf16, #tpu.memory_space<vmem>>, vector<1x128x128xbf16>
    %53 = vector.shape_cast %52 : vector<1x128x128xbf16> to vector<128x128xbf16>
    %cst_37 = arith.constant dense<0.000000e+00> : vector<16x128xf32>
    %54 = tpu.matmul %51, %53, %cst_37 {dimension_numbers = #tpu.dot_dimension_numbers<[1], [0], [0], [1], [0, 0, 1, 1], [], []>} : vector<16x128xbf16>, vector<128x128xbf16>, vector<16x128xf32> -> vector<16x128xf32>
    %55 = arith.addf %50, %54 : vector<16x128xf32>
    %56 = vector.extract_strided_slice %31 {offsets = [80, 0], sizes = [16, 128], strides = [1, 1]} : vector<128x128xbf16> to vector<16x128xbf16>
    %c5 = arith.constant 5 : index
    %c0_38 = arith.constant 0 : index
    %c0_39 = arith.constant 0 : index
    %57 = vector.load %arg6[%c5, %c0_38, %c0_39] : memref<8x128x128xbf16, #tpu.memory_space<vmem>>, vector<1x128x128xbf16>
    %58 = vector.shape_cast %57 : vector<1x128x128xbf16> to vector<128x128xbf16>
    %cst_40 = arith.constant dense<0.000000e+00> : vector<16x128xf32>
    %59 = tpu.matmul %56, %58, %cst_40 {dimension_numbers = #tpu.dot_dimension_numbers<[1], [0], [0], [1], [0, 0, 1, 1], [], []>} : vector<16x128xbf16>, vector<128x128xbf16>, vector<16x128xf32> -> vector<16x128xf32>
    %60 = arith.addf %55, %59 : vector<16x128xf32>
    %61 = vector.extract_strided_slice %31 {offsets = [96, 0], sizes = [16, 128], strides = [1, 1]} : vector<128x128xbf16> to vector<16x128xbf16>
    %c6 = arith.constant 6 : index
    %c0_41 = arith.constant 0 : index
    %c0_42 = arith.constant 0 : index
    %62 = vector.load %arg6[%c6, %c0_41, %c0_42] : memref<8x128x128xbf16, #tpu.memory_space<vmem>>, vector<1x128x128xbf16>
    %63 = vector.shape_cast %62 : vector<1x128x128xbf16> to vector<128x128xbf16>
    %cst_43 = arith.constant dense<0.000000e+00> : vector<16x128xf32>
    %64 = tpu.matmul %61, %63, %cst_43 {dimension_numbers = #tpu.dot_dimension_numbers<[1], [0], [0], [1], [0, 0, 1, 1], [], []>} : vector<16x128xbf16>, vector<128x128xbf16>, vector<16x128xf32> -> vector<16x128xf32>
    %65 = arith.addf %60, %64 : vector<16x128xf32>
    %66 = vector.extract_strided_slice %31 {offsets = [112, 0], sizes = [16, 128], strides = [1, 1]} : vector<128x128xbf16> to vector<16x128xbf16>
    %c7 = arith.constant 7 : index
    %c0_44 = arith.constant 0 : index
    %c0_45 = arith.constant 0 : index
    %67 = vector.load %arg6[%c7, %c0_44, %c0_45] : memref<8x128x128xbf16, #tpu.memory_space<vmem>>, vector<1x128x128xbf16>
    %68 = vector.shape_cast %67 : vector<1x128x128xbf16> to vector<128x128xbf16>
    %cst_46 = arith.constant dense<0.000000e+00> : vector<16x128xf32>
    %69 = tpu.matmul %66, %68, %cst_46 {dimension_numbers = #tpu.dot_dimension_numbers<[1], [0], [0], [1], [0, 0, 1, 1], [], []>} : vector<16x128xbf16>, vector<128x128xbf16>, vector<16x128xf32> -> vector<16x128xf32>
    %70 = arith.addf %65, %69 : vector<16x128xf32>
    %c0_47 = arith.constant 0 : index
    %c0_48 = arith.constant 0 : index
    %71 = vector.load %arg7[%c0_47, %c0_48] : memref<1x128xf32, #tpu.memory_space<vmem>>, vector<1x128xf32>
    %72 = vector.broadcast %71 : vector<1x128xf32> to vector<16x128xf32>
    %73 = arith.addf %70, %72 : vector<16x128xf32>
    %cst_49 = arith.constant 2.000000e+01 : f32
    %74 = vector.broadcast %cst_49 : f32 to vector<16x128xf32>
    %75 = arith.cmpf ogt, %73, %74 : vector<16x128xf32>
    %cst_50 = arith.constant 2.000000e+01 : f32
    %76 = vector.broadcast %cst_50 : f32 to vector<16x128xf32>
    %77 = arith.minimumf %73, %76 : vector<16x128xf32>
    %78 = math.exp %77 : vector<16x128xf32>
    %79 = math.log1p %78 : vector<16x128xf32>
    %80 = arith.select %75, %73, %79 : vector<16x128xi1>, vector<16x128xf32>
    %c0_51 = arith.constant 0 : index
    %c0_52 = arith.constant 0 : index
    %81 = vector.load %arg8[%c0_51, %c0_52] : memref<16x128xf32, #tpu.memory_space<vmem>>, vector<16x128xf32>
    tpu.vector_store %arg8[%c0_51, %c0_52], %80 {strides = array<i32>} : memref<16x128xf32, #tpu.memory_space<vmem>>, vector<16x128xf32>,
    return
  }
  func.func @transform_0(%arg0: i32) -> (i32, i32) {
    %c0_i32 = arith.constant 0 : i32
    %c0_i32_0 = arith.constant 0 : i32
    return %arg0, %c0_i32 : i32, i32
  }
  func.func @transform_1(%arg0: i32) -> (i32, i32) {
    %c0_i32 = arith.constant 0 : i32
    %c0_i32_0 = arith.constant 0 : i32
    %c0_i32_1 = arith.constant 0 : i32
    return %c0_i32, %c0_i32_0 : i32, i32
  }
  func.func @transform_2(%arg0: i32) -> (i32, i32) {
    %c0_i32 = arith.constant 0 : i32
    %c0_i32_0 = arith.constant 0 : i32
    %c0_i32_1 = arith.constant 0 : i32
    return %c0_i32, %c0_i32_0 : i32, i32
  }
  func.func @transform_3(%arg0: i32) -> (i32, i32, i32) {
    %c0_i32 = arith.constant 0 : i32
    %c0_i32_0 = arith.constant 0 : i32
    %c0_i32_1 = arith.constant 0 : i32
    %c0_i32_2 = arith.constant 0 : i32
    return %c0_i32, %c0_i32_0, %c0_i32_1 : i32, i32, i32
  }
  func.func @transform_4(%arg0: i32) -> (i32, i32, i32) {
    %c0_i32 = arith.constant 0 : i32
    %c0_i32_0 = arith.constant 0 : i32
    %c0_i32_1 = arith.constant 0 : i32
    %c0_i32_2 = arith.constant 0 : i32
    return %c0_i32, %c0_i32_0, %c0_i32_1 : i32, i32, i32
  }
  func.func @transform_5(%arg0: i32) -> (i32, i32, i32) {
    %c0_i32 = arith.constant 0 : i32
    %c0_i32_0 = arith.constant 0 : i32
    %c0_i32_1 = arith.constant 0 : i32
    %c0_i32_2 = arith.constant 0 : i32
    return %c0_i32, %c0_i32_0, %c0_i32_1 : i32, i32, i32
  }
  func.func @transform_6(%arg0: i32) -> (i32, i32) {
    %c0_i32 = arith.constant 0 : i32
    %c0_i32_0 = arith.constant 0 : i32
    %c0_i32_1 = arith.constant 0 : i32
    return %c0_i32, %c0_i32_0 : i32, i32
  }
  func.func @transform_7(%arg0: i32) -> (i32, i32) {
    %c0_i32 = arith.constant 0 : i32
    %c0_i32_0 = arith.constant 0 : i32
    return %arg0, %c0_i32 : i32, i32
  }
}

</mosaic_0001>

<bundles_post_ra>
// kernel: tpu_custom_call.1
= control target key start
LH: loop header
LB: loop body
LE: loop exit
PB: predicated region body
PF: predicated region fallthrough
CT: control target
= control target key end

     0   :  { %12 = vsyncpa [#allocation3], 0  ;;  %s3166_s0 = inlined_call_operand.vmem [shape: f32[256,32], index: 0, kind: input, shape index: {}]   ;;  %s3167_s1 = inlined_call_operand.vmem [shape: bf16[32,128], index: 1, kind: input, shape index: {}]   ;;  %s3168_s2 = inlined_call_operand.vmem [shape: f32[1,128], index: 2, kind: input, shape index: {}]   ;;  %s3169_s3 = inlined_call_operand.vmem [shape: bf16[2,128,128], index: 3, kind: input, shape index: {}]   ;;  %s3170_s4 = inlined_call_operand.vmem [shape: f32[2,1,128], index: 4, kind: input, shape index: {}]   ;;  %s3171_s5 = inlined_call_operand.hbm [shape: bf16[8,128,128], index: 5, kind: input, shape index: {}]   ;;  %s3172_s6 = inlined_call_operand.vmem [shape: f32[1,128], index: 6, kind: input, shape index: {}]   ;;  %s3173_s7 = inlined_call_operand.hbm [shape: f32[32,128], index: 7, kind: output, shape index: {}]  }
   0x1   :  { %13 = vsyncpa [#allocation4], 0 }
   0x2   :  { %15 = vsyncpa [#allocation4 + $0x1], 0  ;;  %s2663_s24 = smov 0   ;;  %s2665_s25 = smov 0  }
   0x3   :  { %s2667_s26 = smov 0   ;;  %s2669_s27 = smov 0  }
   0x4 LB: > { %s2684_s28 = sadd.s32 4294967295, %s2613_s27   ;;  %s1893_s29 = sadd.s32 4294967294, %s2613_s27   ;;  %s2613_s27 = sphi %s2669_s27, %s3181_s27   ;;  %s2609_s26 = sphi %s2667_s26, %s3180_s26   ;;  %s2605_s25 = sphi %s2665_s25, %s3179_s25   ;;  %s2601_s24 = sphi %s2663_s24, %s3178_s24  }
   0x5   : > { %s2688_s30 = sadd.s32 1, %s2613_s27   ;;  %s180_s8 = sadd.s32 1, %s2609_s26 }
   0x6   : > { %s177_s9 = ssub.s32 %s2613_s27, %s2688_s30  ;;  %p190_p0 = scmp.ne.s32.totalorder %s2609_s26, %s2605_s25 }
   0x7   : > { %p178_p1 = scmp.eq.s32.totalorder %s177_s9, 0  ;;  %p191_p2 = scmp.eq.s32.totalorder %s2684_s28, 1 }
   0x8   : > { %p196_p3 = scmp.ne.s32.totalorder %s2605_s25, %s2601_s24  ;;  %p197_p4 = scmp.eq.s32.totalorder %s1893_s29, 1 }
   0x9   : > { %s2699_s10 = scalar_select %p178_p1, %s2609_s26, %s180_s8  }
   0xa   : > { %p2701_p5 = por %p191_p2, %p190_p0  ;;  %p2705_p6 = por %p197_p4, %p196_p3 }
   0xb   : > { %p1894_p7 = scmp.ge.s32.totalorder %s2613_s27, 1  ;;  %p204_p8 = scmp.lt.s32.totalorder %s2613_s27, 3 }
   0xc   : > { %s3175_s12 = scalar_select %p2705_p6, 1, 0 }
   0xd   : > { %p2391_p9 = scmp.eq.s32.totalorder %s2684_s28, 0  ;;  %p2712_p10 = pnand %p1894_p7, %p204_p8 }
   0xe   : > { %s2615_s14 = smov [#allocation2]  }
   0xf   : > { %s228_s15 = sshll.u32 %s2615_s14, 4  ;;  %p2383_p11 = pneg %p2712_p10  ;;  %s229_s15 = int_to_ptr.vmem [resolvable:$true] %s228_s15 }
  0x10   : > { %s2534_s16 = scalar_lea.vmem %s229_s15, 8192  ;;  %p2542_p3 = scmp.lt.s32.totalorder %s229_s15, %s229_s15 }
  0x11   : > { %p2384_p12 = pnand %p2391_p9, %p2383_p11  ;;  %p2535_p0 = scmp.ne.s32.totalorder %s229_s15, %s2534_s16 }
  0x12   : > { %p2543_p4 = scmp.lt.s32.totalorder %s2534_s16, %s2534_s16 }
  0x13   : > { %p2525_p13 = pneg %p2384_p12 }
  0x14   : > { %p2544_p6 = por %p2543_p4, %p2542_p3 }
  0x15   : > { %p2537_p1 = pnand %p2535_p0, %p2525_p13 }
  0x17   : > { %p2538_p2 = pneg %p2537_p1 }
  0x19   : > { %p2545_p7 = pnand %p2544_p6, %p2538_p2 }
  0x1b   : > { %2548 = shalt.err (!%p2545_p7)
}
  0x1c   : > { %s2616_s17 = smov 64   ;;  %s2617_s18 = smov 4  }
  0x1d   : > { %2386 = dma.hbm_to_vmem [thread:$0]  (!%p2384_p12), %s3171_s5, 8192, %s229_s15, [#allocation3], %s2616_s17, %s2616_s17, %s2617_s18  }
  0x1e   : > { %256 = sbr.rel (%p2712_p10) target bundleno = 1016 (0x3f8), region = 48 }
  0x23   : > { %2592 = dma.done.wait (%p2391_p9), [#allocation3], 8192  }
  0x24   : > { %2594 = vsyncadd (%p2391_p9), [#allocation3], 4294959104  ;;  %s1900_s21 = sshll.u32 %s2684_s28, 4  ;;  %v2433_v0 = vld [vmem:[%s3167_s1 + $0x8] sm:$0xff]   ;;  %v2434_v1 = vld [vmem:[%s3167_s1] sm:$0xff]   ;;  %vm343_vm0 = vcmask 261120  }
  0x25   : > { %p289_p8 = scmp.lt.s32.totalorder %s1900_s21, 31  ;;  %2133 = vmatprep.subr.bf16.mxu0 %v2433_v0  ;;  %v2435_v11 = vld [vmem:[%s3169_s3 + $0x38] sm:$0xff]   ;;  %v2436_v14 = vld [vmem:[%s3169_s3 + $0x30] sm:$0xff]   ;;  %v2437_v17 = vld [vmem:[%s3169_s3 + $0x28] sm:$0xff]   ;;  %vm2619_vm1 = vmmov 0   ;;  %s285_s15 = sand.u32 1, %s2605_s25  }
  0x26   : > { %2134 = vmatpush3.bf16.msra.mxu0 %v2433_v0  ;;  %2153 = vmatprep.subr.bf16.mxu1 %v2435_v11  ;;  %v2438_v19 = vld [vmem:[%s3169_s3 + $0x20] sm:$0xff]   ;;  %v2439_v25 = vld [vmem:[%s3169_s3 + $0x18] sm:$0xff]   ;;  %v2440_v31 = vld [vmem:[%s3169_s3 + $0x10] sm:$0xff]   ;;  %s1899_s16 = sshll.u32 %s285_s15, 4  ;;  %s2018_s18 = sshll.u32 %s2684_s28, 8 }
  0x27   : > { %s3183_s21 = smov (!%p289_p8, %s1900_s21), 31  ;;  %2135 = vmatprep.subr.bf16.mxu0 %v2434_v1  ;;  %2154 = vmatpush3.bf16.msra.mxu1 %v2435_v11  ;;  %v2441_v32 = vld [vmem:[%s3169_s3 + $0x8] sm:$0xff]   ;;  %v2442_v33 = vld [vmem:[%s3169_s3] sm:$0xff]   ;;  %v2443_v34 = vld [vmem:[%s3169_s3 + $0x78] sm:$0xff]   ;;  %s3126_s28 = scalar_lea.sflag [#allocation4], %s285_s15 }
  0x28   : > { %s1901_s22 = sshll.u32 %s3183_s21, 3  ;;  %2155 = vmatprep.subr.bf16.mxu1 %v2436_v14  ;;  %v2444_v35 = vld [vmem:[%s3169_s3 + $0x70] sm:$0xff]   ;;  %v2445_v36 = vld [vmem:[%s3169_s3 + $0x68] sm:$0xff]   ;;  %v2446_v37 = vld [vmem:[%s3169_s3 + $0x60] sm:$0xff]   ;;  %s3124_s21 = scalar_lea.hbm %s3173_s7, %s2018_s18 }
  0x29   : > { %s2733_s8 = scalar_lea.vmem %s3166_s0, %s1901_s22  ;;  %v2447_v38 = vld [vmem:[%s3169_s3 + $0x58] sm:$0xff]   ;;  %v1902_v41 = vld [vmem:[%s3168_s2] ss:$0 sm:$0xff]  ;;  %s2620_s23 = smov [#allocation5]  }
  0x2a   : > { %v296_v2 = vld [vmem:[%s2733_s8] sm:$0xff]  ;;  %v297_v3 = vld [vmem:[%s2733_s8 + $0x8] sm:$0xff]  ;;  %v298_v5 = vld [vmem:[%s2733_s8 + $0x10] sm:$0xff]  ;;  %2136 = vmatpush3.bf16.msra.mxu0 %v2434_v1  ;;  %s2553_s29 = sshll.u32 %s2620_s23, 4  ;;  %s2554_s29 = int_to_ptr.vmem [resolvable:$false] %s2553_s29 }
  0x2b   : > { %v312_v4 = vpack.c.bf16 %v297_v3, %v296_v2  ;;  %v299_v6 = vld [vmem:[%s2733_s8 + $0x18] sm:$0xff]  ;;  %v300_v7 = vld [vmem:[%s2733_s8 + $0x20] sm:$0xff]  ;;  %v301_v8 = vld [vmem:[%s2733_s8 + $0x28] sm:$0xff]  ;;  %2156 = vmatpush3.bf16.msra.mxu1 %v2436_v14  ;;  %2185 = vmatprep.subr.bf16.mxu0 %v2443_v34  ;;  %s2555_s9 = scalar_lea.vmem %s2554_s29, 512 }
  0x2c   : > { %v313_v9 = vpack.c.bf16 %v299_v6, %v298_v5  ;;  %v314_v10 = vpack.c.bf16 %v301_v8, %v300_v7  ;;  %v302_v12 = vld [vmem:[%s2733_s8 + $0x30] sm:$0xff]  ;;  %v303_v13 = vld [vmem:[%s2733_s8 + $0x38] sm:$0xff]  ;;  %v304_v15 = vld [vmem:[%s2733_s8 + $0x40] sm:$0xff]  ;;  %2157 = vmatprep.subr.bf16.mxu1 %v2437_v17 }
  0x2d   : > { %2137 = vmatprep.mubr.msk.bf16.mxu0 %vm343_vm0, %v312_v4  ;;  %v305_v16 = vld [vmem:[%s2733_s8 + $0x48] sm:$0xff]  ;;  %v315_v18 = vpack.c.bf16 %v303_v13, %v302_v12  ;;  %v306_v21 = vld [vmem:[%s2733_s8 + $0x50] sm:$0xff]  ;;  %v307_v22 = vld [vmem:[%s2733_s8 + $0x58] sm:$0xff] }
  0x2e   : > { %2138 = vmatmul.mubr.msk.bf16.vlgmr.msra.gmra.mxu0 %vm343_vm0, %v313_v9  ;;  %v316_v20 = vpack.c.bf16 %v305_v16, %v304_v15  ;;  %v308_v23 = vld [vmem:[%s2733_s8 + $0x60] sm:$0xff]  ;;  %v309_v24 = vld [vmem:[%s2733_s8 + $0x68] sm:$0xff]  ;;  %v317_v26 = vpack.c.bf16 %v307_v22, %v306_v21  ;;  %v310_v28 = vld [vmem:[%s2733_s8 + $0x70] sm:$0xff] }
  0x2f   : > { %2141 = vmatprep.mubr.msk.bf16.mxu0 %vm343_vm0, %v314_v10  ;;  %2158 = vmatpush3.bf16.msra.mxu1 %v2437_v17  ;;  %v318_v27 = vpack.c.bf16 %v309_v24, %v308_v23  ;;  %v311_v29 = vld [vmem:[%s2733_s8 + $0x78] sm:$0xff]  ;;  %s287_s8 = scalar_lea.vmem [#allocation5], %s1899_s16 }
  0x30   : > { %2159 = vmatprep.subr.bf16.mxu1 %v2438_v19  ;;  %v319_v30 = vpack.c.bf16 %v311_v29, %v310_v28  ;;  %2186 = vmatpush3.bf16.msra.mxu0 %v2443_v34  ;;  %v2450_v34 = vld [vmem:[%s3169_s3 + $0x40] sm:$0xff]   ;;  %s1819_s17 = sshll.u32 %s287_s8, 4  ;;  %s3119_s17 = int_to_ptr.vmem [resolvable:$true] %s1819_s17 }
  0x31   : > { %2187 = vmatprep.subr.bf16.mxu0 %v2444_v35  ;;  %s2549_s22 = scalar_lea.vmem %s3119_s17, 256  ;;  %p2556_p11 = scmp.lt.s32.totalorder %s3119_s17, %s2554_s29 }
  0x32   : > { %p2550_p6 = scmp.ne.s32.totalorder %s3119_s17, %s2549_s22  ;;  %p2557_p12 = scmp.lt.s32.totalorder %s2555_s9, %s2549_s22 }
  0x33   : > { %2160 = vmatpush3.bf16.msra.mxu1 %v2438_v19 }
  0x34   : > { %2161 = vmatprep.subr.bf16.mxu1 %v2439_v25  ;;  %2188 = vmatpush3.bf16.msra.mxu0 %v2444_v35  ;;  %v2451_v35 = vld [vmem:[#allocation2 + $0x78] sm:$0xff]   ;;  %p2551_p9 = pnand %p2550_p6, %p2701_p5  ;;  %p2558_p13 = por %p2557_p12, %p2556_p11 }
  0x35   : > { %2189 = vmatprep.subr.bf16.mxu0 %v2445_v36 }
  0x36   : > { %2142 = vmatmul.mubr.msk.bf16.gmra.mxu0 %vm343_vm0, %v315_v18  ;;  %p2552_p10 = pneg %p2551_p9 }
  0x37   : > { %2145 = vmatprep.mubr.msk.bf16.mxu0 %vm343_vm0, %v316_v20  ;;  %2162 = vmatpush3.bf16.msra.mxu1 %v2439_v25 }
  0x38   : > { %2163 = vmatprep.subr.bf16.mxu1 %v2440_v31  ;;  %2190 = vmatpush3.bf16.msra.mxu0 %v2445_v36  ;;  %v2618_v36 = vmov 0.0   ;;  %p2559_p0 = pnand %p2558_p13, %p2552_p10 }
  0x39   : > { %2191 = vmatprep.subr.bf16.mxu0 %v2446_v37 }
  0x3b   : > { %2164 = vmatpush3.bf16.msra.mxu1 %v2440_v31 }
  0x3c   : > { %2165 = vmatprep.subr.bf16.mxu1 %v2441_v32  ;;  %2192 = vmatpush3.bf16.msra.mxu0 %v2446_v37  ;;  %v2453_v37 = vld [vmem:[#allocation2 + $0x70] sm:$0xff]  }
  0x3d   : > { %2193 = vmatprep.subr.bf16.mxu0 %v2447_v38 }
  0x3e   : > { %2146 = vmatmul.mubr.msk.bf16.gmra.mxu0 %vm343_vm0, %v317_v26 }
  0x3f   : > { %2149 = vmatprep.mubr.msk.bf16.mxu0 %vm343_vm0, %v318_v27  ;;  %2166 = vmatpush3.bf16.msra.mxu1 %v2441_v32  ;;  %v2448_v32 = vld [vmem:[%s3169_s3 + $0x50] sm:$0xff]  }
  0x40   : > { %2167 = vmatprep.subr.bf16.mxu1 %v2442_v33  ;;  %2194 = vmatpush3.bf16.msra.mxu0 %v2447_v38  ;;  %v2455_v38 = vld [vmem:[#allocation2 + $0x68] sm:$0xff]  }
  0x41   : > { %2195 = vmatprep.subr.bf16.mxu0 %v2448_v32 }
  0x43   : > { %2168 = vmatpush3.bf16.msra.mxu1 %v2442_v33  ;;  %v2449_v33 = vld [vmem:[%s3169_s3 + $0x48] sm:$0xff]  }
  0x44   : > { %2196 = vmatpush3.bf16.msra.mxu0 %v2448_v32  ;;  %2217 = vmatprep.subr.bf16.mxu1 %v2618_v36 }
  0x45   : > { %2197 = vmatprep.subr.bf16.mxu0 %v2449_v33 }
  0x46   : > { %2150 = vmatmul.mubr.msk.bf16.gmra.mxu0 %vm343_vm0, %v319_v30 }
  0x48   : > { %2198 = vmatpush3.bf16.msra.mxu0 %v2449_v33 }
  0x49   : > { %2199 = vmatprep.subr.bf16.mxu0 %v2450_v34 }
  0x4c   : > { %2200 = vmatpush3.bf16.msra.mxu0 %v2450_v34  ;;  %v2454_v34 = vld [vmem:[#allocation2 + $0x30] sm:$0xff]  }
  0x4d   : > { %2237 = vmatprep.subr.bf16.mxu0 %v2618_v36 }
  0xee   : > { %v2139_v39 = vpop.f32.mrf.mxu0 }
  0xef   : > { %v2811_v45 = vadd.f32 %v2139_v39, %v1902_v41  ;;  %v2457_v39 = vld [vmem:[#allocation2 + $0x60] sm:$0xff]  }
  0xf0   : > { %v402_v40 = vpop.f32.mrf.mxu0 }
  0xf1   : > { %v2807_v43 = vadd.f32 %v1902_v41, %v402_v40  ;;  %v467_v52 = vmax.f32 %v2811_v45, 0.0  ;;  %v2459_v40 = vld [vmem:[#allocation2 + $0x58] sm:$0xff]  }
  0xf2   : > { %v2140_v42 = vpop.f32.mrf.mxu0 }
  0xf3   : > { %v2809_v44 = vadd.f32 %v2140_v42, %v1902_v41  ;;  %v465_v50 = vmax.f32 %v2807_v43, 0.0  ;;  %v2906_v42 = vld [vmem:[%s3170_s4] ss:$0 sm:$0xff] }
  0xf4   : > { %v405_v46 = vpop.f32.mrf.mxu0 }
  0xf5   : > { %v2813_v47 = vadd.f32 %v1902_v41, %v405_v46  ;;  %v468_v48 = vmax.f32 %v2809_v44, 0.0 }
  0xf6   : > { %v2143_v49 = vpop.f32.mrf.mxu0 }
  0xf7   : > { %v466_v51 = vmax.f32 %v2813_v47, 0.0  ;;  %v2819_v53 = vadd.f32 %v2143_v49, %v1902_v41  ;;  %v482_v57 = vpack.c.bf16 %v468_v48, %v467_v52 }
  0xf8   : > { %v418_v54 = vpop.f32.mrf.mxu0 }
  0xf9   : > { %v2821_v55 = vadd.f32 %v1902_v41, %v418_v54  ;;  %v481_v56 = vpack.c.bf16 %v466_v51, %v465_v50  ;;  %v471_v60 = vmax.f32 %v2819_v53, 0.0 }
  0xfa   : > { %v2144_v58 = vpop.f32.mrf.mxu0 }
  0xfb   : > { %v2831_v59 = vadd.f32 %v2144_v58, %v1902_v41  ;;  %2169 = vmatprep.mubr.bf16.mxu1 %v481_v56  ;;  %v469_v62 = vmax.f32 %v2821_v55, 0.0 }
  0xfc   : > { %v421_v61 = vpop.f32.mrf.mxu0  ;;  %2170 = vmatmul.mubr.bf16.vlgmr.msra.gmra.mxu1 %v482_v57 }
  0xfd   : > { %v472_v63 = vmax.f32 %v2831_v59, 0.0  ;;  %v2836_v0 = vadd.f32 %v1902_v41, %v421_v61  ;;  %2218 = vmatpush3.bf16.msra.mxu1 %v2451_v35 }
  0xfe   : > { %v2147_v1 = vpop.f32.mrf.mxu0  ;;  %2219 = vmatprep.subr.bf16.mxu1 %v2618_v36 }
  0xff   : > { %v470_v2 = vmax.f32 %v2836_v0, 0.0  ;;  %v484_v3 = vpack.c.bf16 %v472_v63, %v471_v60  ;;  %v2843_v4 = vadd.f32 %v2147_v1, %v1902_v41 }
 0x100   : > { %v434_v5 = vpop.f32.mrf.mxu0 }
 0x101   : > { %v483_v6 = vpack.c.bf16 %v470_v2, %v469_v62  ;;  %v2849_v7 = vadd.f32 %v1902_v41, %v434_v5  ;;  %v475_v10 = vmax.f32 %v2843_v4, 0.0  ;;  %2220 = vmatpush3.bf16.msra.mxu1 %v2453_v37 }
 0x102   : > { %v2148_v8 = vpop.f32.mrf.mxu0  ;;  %2221 = vmatprep.subr.bf16.mxu1 %v2618_v36 }
 0x103   : > { %v2851_v9 = vadd.f32 %v2148_v8, %v1902_v41  ;;  %2173 = vmatprep.mubr.bf16.mxu1 %v483_v6  ;;  %v473_v12 = vmax.f32 %v2849_v7, 0.0 }
 0x104   : > { %v437_v11 = vpop.f32.mrf.mxu0  ;;  %2174 = vmatmul.mubr.bf16.gmra.mxu1 %v484_v3 }
 0x105   : > { %v476_v13 = vmax.f32 %v2851_v9, 0.0  ;;  %v2856_v14 = vadd.f32 %v1902_v41, %v437_v11  ;;  %2222 = vmatpush3.bf16.msra.mxu1 %v2455_v38 }
 0x106   : > { %v2151_v15 = vpop.f32.mrf.mxu0  ;;  %2223 = vmatprep.subr.bf16.mxu1 %v2618_v36 }
 0x107   : > { %v474_v16 = vmax.f32 %v2856_v14, 0.0  ;;  %v486_v17 = vpack.c.bf16 %v476_v13, %v475_v10  ;;  %v2863_v18 = vadd.f32 %v2151_v15, %v1902_v41 }
 0x108   : > { %v450_v19 = vpop.f32.mrf.mxu0 }
 0x109   : > { %v485_v20 = vpack.c.bf16 %v474_v16, %v473_v12  ;;  %v2869_v21 = vadd.f32 %v1902_v41, %v450_v19  ;;  %v479_v24 = vmax.f32 %v2863_v18, 0.0  ;;  %2224 = vmatpush3.bf16.msra.mxu1 %v2457_v39  ;;  %v2464_v18 = vld [vmem:[#allocation2 + $0x8] sm:$0xff]  }
 0x10a   : > { %v2152_v22 = vpop.f32.mrf.mxu0  ;;  %2225 = vmatprep.subr.bf16.mxu1 %v2618_v36 }
 0x10b   : > { %v2871_v23 = vadd.f32 %v2152_v22, %v1902_v41  ;;  %2177 = vmatprep.mubr.bf16.mxu1 %v485_v20  ;;  %v477_v26 = vmax.f32 %v2869_v21, 0.0  ;;  %v2462_v21 = vld [vmem:[#allocation2 + $0x10] sm:$0xff]  }
 0x10c   : > { %v453_v25 = vpop.f32.mrf.mxu0  ;;  %2178 = vmatmul.mubr.bf16.gmra.mxu1 %v486_v17 }
 0x10d   : > { %v480_v27 = vmax.f32 %v2871_v23, 0.0  ;;  %v2876_v28 = vadd.f32 %v1902_v41, %v453_v25  ;;  %2226 = vmatpush3.bf16.msra.mxu1 %v2459_v40 }
 0x10e   : > { %2227 = vmatprep.subr.bf16.mxu1 %v2618_v36 }
 0x10f   : > { %v478_v29 = vmax.f32 %v2876_v28, 0.0  ;;  %v488_v30 = vpack.c.bf16 %v480_v27, %v479_v24  ;;  %v2466_v28 = vld [vmem:[#allocation2] sm:$0xff]  }
 0x111   : > { %v487_v31 = vpack.c.bf16 %v478_v29, %v477_v26 }
 0x113   : > { %2181 = vmatprep.mubr.bf16.mxu1 %v487_v31 }
 0x114   : > { %2182 = vmatmul.mubr.bf16.gmra.mxu1 %v488_v30 }
 0x115   : > { %2233 = vmatprep.mubr.msk.bf16.mxu1 %vm2619_vm1, %v2618_v36 }
 0x1bc   : > { %v2171_v41 = vpop.f32.mrf.mxu1 }
 0x1bd   : > { %v603_v54 = vadd.f32 %v2171_v41, %v2906_v42 }
 0x1be   : > { %v594_v46 = vpop.f32.mrf.mxu1 }
 0x1bf   : > { %v595_v49 = vadd.f32 %v2906_v42, %v594_v46  ;;  %v659_v5 = vmax.f32 %v603_v54, 0.0 }
 0x1c0   : > { %v2172_v56 = vpop.f32.mrf.mxu1 }
 0x1c1   : > { %v606_v57 = vadd.f32 %v2172_v56, %v2906_v42  ;;  %v657_v61 = vmax.f32 %v595_v49, 0.0  ;;  %v2927_v22 = vadd.f32 %v659_v5, %v467_v52 }
 0x1c2   : > { %v597_v58 = vpop.f32.mrf.mxu1 }
 0x1c3   : > { %v660_v1 = vmax.f32 %v606_v57, 0.0  ;;  %v598_v3 = vadd.f32 %v2906_v42, %v597_v58  ;;  %v2918_v17 = vadd.f32 %v657_v61, %v465_v50  ;;  %v2452_v50 = vld [vmem:[#allocation2 + $0x38] sm:$0xff]   ;;  %v2458_v58 = vld [vmem:[#allocation2 + $0x20] sm:$0xff]  }
 0x1c4   : > { %v2175_v6 = vpop.f32.mrf.mxu1 }
 0x1c5   : > { %v658_v8 = vmax.f32 %v598_v3, 0.0  ;;  %v2914_v11 = vadd.f32 %v660_v1, %v468_v48  ;;  %v619_v25 = vadd.f32 %v2175_v6, %v2906_v42 }
 0x1c6   : > { %v610_v15 = vpop.f32.mrf.mxu1 }
 0x1c7   : > { %v2922_v19 = vadd.f32 %v658_v8, %v466_v51  ;;  %v611_v20 = vadd.f32 %v2906_v42, %v610_v15  ;;  %v690_v47 = vpack.c.bf16 %v2914_v11, %v2927_v22  ;;  %v663_v45 = vmax.f32 %v619_v25, 0.0 }
 0x1c8   : > { %v2176_v44 = vpop.f32.mrf.mxu1 }
 0x1c9   : > { %v622_v48 = vadd.f32 %v2176_v44, %v2906_v42  ;;  %v689_v43 = vpack.c.bf16 %v2922_v19, %v2918_v17  ;;  %v661_v30 = vmax.f32 %v611_v20, 0.0  ;;  %v2952_v41 = vadd.f32 %v663_v45, %v471_v60 }
 0x1ca   : > { %v613_v51 = vpop.f32.mrf.mxu1 }
 0x1cb   : > { %v664_v31 = vmax.f32 %v622_v48, 0.0  ;;  %v614_v32 = vadd.f32 %v2906_v42, %v613_v51  ;;  %2201 = vmatprep.mubr.bf16.mxu0 %v689_v43  ;;  %v2943_v38 = vadd.f32 %v661_v30, %v469_v62  ;;  %v2456_v62 = vld [vmem:[#allocation2 + $0x28] sm:$0xff]  }
 0x1cc   : > { %v2179_v52 = vpop.f32.mrf.mxu1  ;;  %2202 = vmatmul.mubr.bf16.vlgmr.msra.gmra.mxu0 %v690_v47 }
 0x1cd   : > { %v662_v33 = vmax.f32 %v614_v32, 0.0  ;;  %2238 = vmatpush3.bf16.msra.mxu0 %v2452_v50  ;;  %v2938_v35 = vadd.f32 %v664_v31, %v472_v63  ;;  %v635_v59 = vadd.f32 %v2179_v52, %v2906_v42 }
 0x1ce   : > { %v626_v37 = vpop.f32.mrf.mxu1  ;;  %2239 = vmatprep.subr.bf16.mxu0 %v2618_v36 }
 0x1cf   : > { %v2947_v39 = vadd.f32 %v662_v33, %v470_v2  ;;  %v627_v40 = vadd.f32 %v2906_v42, %v626_v37  ;;  %v692_v0 = vpack.c.bf16 %v2938_v35, %v2952_v41  ;;  %v667_v54 = vmax.f32 %v635_v59, 0.0 }
 0x1d0   : > { %v2180_v63 = vpop.f32.mrf.mxu1 }
 0x1d1   : > { %v638_v46 = vadd.f32 %v2180_v63, %v2906_v42  ;;  %v691_v55 = vpack.c.bf16 %v2947_v39, %v2943_v38  ;;  %2240 = vmatpush3.bf16.msra.mxu0 %v2454_v34  ;;  %v665_v2 = vmax.f32 %v627_v40, 0.0  ;;  %v2978_v8 = vadd.f32 %v667_v54, %v475_v10  ;;  %v2469_v54 = vld [vmem:[#allocation2 + $0xb0] sm:$0xff]  }
 0x1d2   : > { %v629_v49 = vpop.f32.mrf.mxu1  ;;  %2241 = vmatprep.subr.bf16.mxu0 %v2618_v36 }
 0x1d3   : > { %v668_v53 = vmax.f32 %v638_v46, 0.0  ;;  %v630_v60 = vadd.f32 %v2906_v42, %v629_v49  ;;  %2205 = vmatprep.mubr.bf16.mxu0 %v691_v55  ;;  %v2969_v3 = vadd.f32 %v665_v2, %v473_v12  ;;  %v2460_v12 = vld [vmem:[#allocation2 + $0x18] sm:$0xff]  }
 0x1d4   : > { %v2183_v56 = vpop.f32.mrf.mxu1  ;;  %2206 = vmatmul.mubr.bf16.gmra.mxu0 %v692_v0 }
 0x1d5   : > { %v666_v57 = vmax.f32 %v630_v60, 0.0  ;;  %2242 = vmatpush3.bf16.msra.mxu0 %v2456_v62  ;;  %v2964_v61 = vadd.f32 %v668_v53, %v476_v13  ;;  %v651_v9 = vadd.f32 %v2183_v56, %v2906_v42  ;;  %v2467_v62 = vld [vmem:[#allocation2 + $0xb8] sm:$0xff]   ;;  %v2472_v56 = vld [vmem:[#allocation2 + $0xe8] sm:$0xff]  }
 0x1d6   : > { %v642_v1 = vpop.f32.mrf.mxu1  ;;  %2243 = vmatprep.subr.bf16.mxu0 %v2618_v36  ;;  %v2468_v53 = vld [vmem:[#allocation2 + $0xf8] sm:$0xff]  }
 0x1d7   : > { %v2973_v5 = vadd.f32 %v666_v57, %v474_v16  ;;  %v643_v6 = vadd.f32 %v2906_v42, %v642_v1  ;;  %v694_v14 = vpack.c.bf16 %v2964_v61, %v2978_v8  ;;  %v671_v25 = vmax.f32 %v651_v9, 0.0  ;;  %v2473_v57 = vld [vmem:[#allocation2 + $0xa0] sm:$0xff]  }
 0x1d8   : > { %v2184_v13 = vpop.f32.mrf.mxu1  ;;  %v2474_v1 = vld [vmem:[#allocation2 + $0xe0] sm:$0xff]  }
 0x1d9   : > { %v654_v15 = vadd.f32 %v2184_v13, %v2906_v42  ;;  %v693_v7 = vpack.c.bf16 %v2973_v5, %v2969_v3  ;;  %2244 = vmatpush3.bf16.msra.mxu0 %v2458_v58  ;;  %v669_v16 = vmax.f32 %v643_v6, 0.0  ;;  %v2475_v6 = vld [vmem:[#allocation2 + $0x98] sm:$0xff]  }
 0x1da   : > { %v645_v20 = vpop.f32.mrf.mxu1  ;;  %2245 = vmatprep.subr.bf16.mxu0 %v2618_v36  ;;  %v2476_v13 = vld [vmem:[#allocation2 + $0xd8] sm:$0xff]  }
 0x1db   : > { %v672_v4 = vmax.f32 %v654_v15, 0.0  ;;  %v646_v10 = vadd.f32 %v2906_v42, %v645_v20  ;;  %2209 = vmatprep.mubr.bf16.mxu0 %v693_v7  ;;  %v2995_v43 = vadd.f32 %v669_v16, %v477_v26  ;;  %v3003_v42 = vadd.f32 %v671_v25, %v479_v24  ;;  %v2463_v26 = vld [vmem:[#allocation2 + $0x48] sm:$0xff]   ;;  %v2465_v24 = vld [vmem:[#allocation2 + $0x40] sm:$0xff]   ;;  %v2477_v15 = vld [vmem:[#allocation2 + $0x90] sm:$0xff]  }
 0x1dc   : > { %2210 = vmatmul.mubr.bf16.gmra.mxu0 %v694_v14  ;;  %v2479_v16 = vld [vmem:[#allocation2 + $0x88] sm:$0xff]  }
 0x1dd   : > { %v670_v44 = vmax.f32 %v646_v10, 0.0  ;;  %2246 = vmatpush3.bf16.msra.mxu0 %v2460_v12  ;;  %v2990_v48 = vadd.f32 %v672_v4, %v480_v27  ;;  %v2461_v27 = vld [vmem:[#allocation2 + $0x50] sm:$0xff]   ;;  %v2480_v25 = vld [vmem:[#allocation2 + $0xc8] sm:$0xff]  }
 0x1de   : > { %2247 = vmatprep.subr.bf16.mxu0 %v2618_v36  ;;  %2228 = vmatpush3.bf16.msra.mxu1 %v2461_v27  ;;  %v2478_v12 = vld [vmem:[#allocation2 + $0xd0] sm:$0xff]  }
 0x1df   : > { %v2999_v50 = vadd.f32 %v670_v44, %v478_v29  ;;  %v696_v23 = vpack.c.bf16 %v2990_v48, %v3003_v42  ;;  %2229 = vmatprep.subr.bf16.mxu1 %v2618_v36  ;;  %v3022_v29 = vld [vmem:[%s3170_s4 + $0x1] ss:$0 sm:$0xff] }
 0x1e1   : > { %v695_v47 = vpack.c.bf16 %v2999_v50, %v2995_v43  ;;  %2248 = vmatpush3.bf16.msra.mxu0 %v2462_v21 }
 0x1e2   : > { %2249 = vmatprep.subr.bf16.mxu0 %v2618_v36  ;;  %2230 = vmatpush3.bf16.msra.mxu1 %v2463_v26  ;;  %v2482_v26 = vld [vmem:[#allocation2 + $0xc0] sm:$0xff]  }
 0x1e3   : > { %2213 = vmatprep.mubr.bf16.mxu0 %v695_v47  ;;  %2231 = vmatprep.subr.bf16.mxu1 %v2618_v36 }
 0x1e4   : > { %2214 = vmatmul.mubr.bf16.gmra.mxu0 %v696_v23  ;;  %v2481_v23 = vld [vmem:[#allocation2 + $0x80] sm:$0xff]  }
 0x1e5   : > { %2250 = vmatpush3.bf16.msra.mxu0 %v2464_v18  ;;  %2253 = vmatprep.mubr.msk.bf16.mxu0 %vm2619_vm1, %v2618_v36 }
 0x1e6   : > { %2251 = vmatprep.subr.bf16.mxu0 %v2618_v36  ;;  %2232 = vmatpush3.bf16.msra.mxu1 %v2465_v24 }
 0x1e7   : > { %2257 = vmatprep.subr.bf16.mxu1 %v2618_v36 }
 0x1e9   : > { %2252 = vmatpush3.bf16.msra.mxu0 %v2466_v28  ;;  %v2483_v28 = vld [vmem:[#allocation2 + $0x138] sm:$0xff]  }
 0x1ea   : > { %2277 = vmatprep.subr.bf16.mxu0 %v2618_v36 }
 0x28c   : > { %v2203_v51 = vpop.f32.mrf.mxu0 }
 0x28d   : > { %v813_v30 = vadd.f32 %v2203_v51, %v3022_v29 }
 0x28e   : > { %v804_v31 = vpop.f32.mrf.mxu0 }
 0x28f   : > { %v805_v32 = vadd.f32 %v3022_v29, %v804_v31  ;;  %v869_v52 = vmax.f32 %v813_v30, 0.0  ;;  %v2484_v31 = vld [vmem:[#allocation2 + $0x178] sm:$0xff]  }
 0x290   : > { %v2204_v45 = vpop.f32.mrf.mxu0 }
 0x291   : > { %v816_v33 = vadd.f32 %v2204_v45, %v3022_v29  ;;  %v867_v37 = vmax.f32 %v805_v32, 0.0  ;;  %v885_v63 = vadd.f32 %v869_v52, %v2927_v22  ;;  %v2485_v32 = vld [vmem:[#allocation2 + $0x130] sm:$0xff]   ;;  %v2488_v52 = vld [vmem:[#allocation2 + $0x168] sm:$0xff]  }
 0x292   : > { %v807_v34 = vpop.f32.mrf.mxu0 }
 0x293   : > { %v870_v40 = vmax.f32 %v816_v33, 0.0  ;;  %v808_v59 = vadd.f32 %v3022_v29, %v807_v34  ;;  %v883_v49 = vadd.f32 %v867_v37, %v2918_v17  ;;  %v2471_v17 = vld [vmem:[#allocation2 + $0xa8] sm:$0xff]   ;;  %v2489_v33 = vld [vmem:[#allocation2 + $0x120] sm:$0xff]  }
 0x294   : > { %v2207_v22 = vpop.f32.mrf.mxu0  ;;  %v2490_v37 = vld [vmem:[#allocation2 + $0x160] sm:$0xff]  }
 0x295   : > { %v886_v46 = vadd.f32 %v870_v40, %v2914_v11  ;;  %v868_v55 = vmax.f32 %v808_v59, 0.0  ;;  %v2470_v11 = vld [vmem:[#allocation2 + $0xf0] sm:$0xff]   ;;  %v829_v4 = vadd.f32 %v2207_v22, %v3022_v29  ;;  %v2491_v40 = vld [vmem:[#allocation2 + $0x118] sm:$0xff]  }
 0x297   : > { %v900_v0 = vpack.c.bf16 %v886_v46, %v885_v63  ;;  %v884_v2 = vadd.f32 %v868_v55, %v2922_v19  ;;  %v820_v19 = vpop.f32.mrf.mxu0  ;;  %v873_v27 = vmax.f32 %v829_v4, 0.0  ;;  %v2492_v63 = vld [vmem:[#allocation2 + $0x158] sm:$0xff]   ;;  %v2493_v46 = vld [vmem:[#allocation2 + $0x110] sm:$0xff]   ;;  %v2506_v4 = vld [vmem:[#allocation2 + $0x1e0] sm:$0xff]  }
 0x298   : > { %v821_v20 = vadd.f32 %v3022_v29, %v820_v19 }
 0x299   : > { %v899_v60 = vpack.c.bf16 %v884_v2, %v883_v49  ;;  %2234 = vmatmul.mubr.bf16.vlgmr.msra.gmra.mxu1 %v900_v0  ;;  %v2208_v58 = vpop.f32.mrf.mxu0  ;;  %v889_v51 = vadd.f32 %v873_v27, %v2952_v41  ;;  %v2487_v41 = vld [vmem:[#allocation2 + $0x128] sm:$0xff]   ;;  %v2510_v27 = vld [vmem:[#allocation2 + $0x1d0] sm:$0xff]  }
 0x29a   : > { %2258 = vmatpush3.bf16.msra.mxu1 %v2467_v62  ;;  %2273 = vmatprep.mubr.msk.bf16.mxu1 %vm2619_vm1, %v2618_v36  ;;  %v832_v14 = vadd.f32 %v2208_v58, %v3022_v29  ;;  %v871_v44 = vmax.f32 %v821_v20, 0.0  ;;  %v2494_v62 = vld [vmem:[#allocation2 + $0x150] sm:$0xff]   ;;  %v2495_v2 = vld [vmem:[#allocation2 + $0x108] sm:$0xff]  }
 0x29b   : > { %2254 = vmatmul.mubr.bf16.vlgmr.msra.gmra.mxu0 %v899_v60  ;;  %2259 = vmatprep.subr.bf16.mxu1 %v2618_v36  ;;  %v823_v9 = vpop.f32.mrf.mxu0  ;;  %v2504_v20 = vld [vmem:[#allocation2 + $0x1e8] sm:$0xff]  }
 0x29c   : > { %2278 = vmatpush3.bf16.msra.mxu0 %v2468_v53  ;;  %2293 = vmatprep.mubr.msk.bf16.mxu0 %vm2619_vm1, %v2618_v36  ;;  %v824_v7 = vadd.f32 %v3022_v29, %v823_v9  ;;  %v874_v47 = vmax.f32 %v832_v14, 0.0  ;;  %v887_v18 = vadd.f32 %v871_v44, %v2943_v38  ;;  %v2486_v38 = vld [vmem:[#allocation2 + $0x170] sm:$0xff]   ;;  %v2505_v14 = vld [vmem:[#allocation2 + $0x1a0] sm:$0xff]   ;;  %v2508_v44 = vld [vmem:[#allocation2 + $0x1d8] sm:$0xff]  }
 0x29d   : > { %2279 = vmatprep.subr.bf16.mxu0 %v2618_v36 }
 0x29e   : > { %2260 = vmatpush3.bf16.msra.mxu1 %v2469_v54  ;;  %v872_v10 = vmax.f32 %v824_v7, 0.0  ;;  %v890_v24 = vadd.f32 %v874_v47, %v2938_v35  ;;  %v2211_v35 = vpop.f32.mrf.mxu0  ;;  %v2496_v54 = vld [vmem:[#allocation2 + $0x148] sm:$0xff]   ;;  %v2501_v7 = vld [vmem:[#allocation2 + $0x1b0] sm:$0xff]  }
 0x29f   : > { %2261 = vmatprep.subr.bf16.mxu1 %v2618_v36  ;;  %v845_v53 = vadd.f32 %v2211_v35, %v3022_v29  ;;  %v2509_v47 = vld [vmem:[#allocation2 + $0x190] sm:$0xff]  }
 0x2a0   : > { %2280 = vmatpush3.bf16.msra.mxu0 %v2470_v11  ;;  %v888_v21 = vadd.f32 %v872_v10, %v2947_v39  ;;  %v902_v39 = vpack.c.bf16 %v890_v24, %v889_v51  ;;  %v836_v45 = vpop.f32.mrf.mxu0  ;;  %v2507_v10 = vld [vmem:[#allocation2 + $0x198] sm:$0xff]   ;;  %v2512_v51 = vld [vmem:[#allocation2 + $0x1c8] sm:$0xff]  }
 0x2a1   : > { %2281 = vmatprep.subr.bf16.mxu0 %v2618_v36  ;;  %v837_v49 = vadd.f32 %v3022_v29, %v836_v45  ;;  %v877_v19 = vmax.f32 %v845_v53, 0.0 }
 0x2a2   : > { %2262 = vmatpush3.bf16.msra.mxu1 %v2471_v17  ;;  %v901_v30 = vpack.c.bf16 %v888_v21, %v887_v18  ;;  %v2212_v34 = vpop.f32.mrf.mxu0  ;;  %v2497_v17 = vld [vmem:[#allocation2 + $0x100] sm:$0xff]   ;;  %v2511_v18 = vld [vmem:[#allocation2 + $0x188] sm:$0xff]  }
 0x2a3   : > { %2263 = vmatprep.subr.bf16.mxu1 %v2618_v36  ;;  %v848_v0 = vadd.f32 %v2212_v34, %v3022_v29  ;;  %v875_v22 = vmax.f32 %v837_v49, 0.0  ;;  %v893_v9 = vadd.f32 %v877_v19, %v2978_v8  ;;  %v2503_v8 = vld [vmem:[#allocation2 + $0x1a8] sm:$0xff]  }
 0x2a4   : > { %2282 = vmatpush3.bf16.msra.mxu0 %v2472_v56  ;;  %v839_v59 = vpop.f32.mrf.mxu0 }
 0x2a5   : > { %2283 = vmatprep.subr.bf16.mxu0 %v2618_v36  ;;  %v840_v55 = vadd.f32 %v3022_v29, %v839_v59  ;;  %v878_v11 = vmax.f32 %v848_v0, 0.0  ;;  %v891_v58 = vadd.f32 %v875_v22, %v2969_v3  ;;  %v2502_v3 = vld [vmem:[#allocation2 + $0x1f0] sm:$0xff]  }
 0x2a6   : > { %2264 = vmatpush3.bf16.msra.mxu1 %v2473_v57  ;;  %v2498_v57 = vld [vmem:[#allocation2 + $0x140] sm:$0xff]  }
 0x2a7   : > { %2265 = vmatprep.subr.bf16.mxu1 %v2618_v36  ;;  %v876_v60 = vmax.f32 %v840_v55, 0.0 }
 0x2a8   : > { %2284 = vmatpush3.bf16.msra.mxu0 %v2474_v1  ;;  %v894_v1 = vadd.f32 %v878_v11, %v2964_v61  ;;  %v2215_v61 = vpop.f32.mrf.mxu0 }
 0x2a9   : > { %2285 = vmatprep.subr.bf16.mxu0 %v2618_v36  ;;  %v892_v56 = vadd.f32 %v876_v60, %v2973_v5  ;;  %v861_v24 = vadd.f32 %v2215_v61, %v3022_v29 }
 0x2aa   : > { %2266 = vmatpush3.bf16.msra.mxu1 %v2475_v6  ;;  %v2499_v6 = vld [vmem:[#allocation2 + $0x1b8] sm:$0xff]   ;;  %v904_v5 = vpack.c.bf16 %v894_v1, %v893_v9 }
 0x2ab   : > { %2267 = vmatprep.subr.bf16.mxu1 %v2618_v36 }
 0x2ac   : > { %2286 = vmatpush3.bf16.msra.mxu0 %v2476_v13  ;;  %v903_v13 = vpack.c.bf16 %v892_v56, %v891_v58 }
 0x2ad   : > { %2287 = vmatprep.subr.bf16.mxu0 %v2618_v36 }
 0x2ae   : > { %2268 = vmatpush3.bf16.msra.mxu1 %v2477_v15  ;;  %v2500_v15 = vld [vmem:[#allocation2 + $0x1f8] sm:$0xff]  }
 0x2af   : > { %2269 = vmatprep.subr.bf16.mxu1 %v2618_v36 }
 0x2b0   : > { %2288 = vmatpush3.bf16.msra.mxu0 %v2478_v12  ;;  %v852_v12 = vpop.f32.mrf.mxu0 }
 0x2b1   : > { %2289 = vmatprep.subr.bf16.mxu0 %v2618_v36  ;;  %v853_v21 = vadd.f32 %v3022_v29, %v852_v12 }
 0x2b2   : > { %2270 = vmatpush3.bf16.msra.mxu1 %v2479_v16  ;;  %v2216_v16 = vpop.f32.mrf.mxu0 }
 0x2b3   : > { %2271 = vmatprep.subr.bf16.mxu1 %v2618_v36 }
 0x2b4   : > { %2290 = vmatpush3.bf16.msra.mxu0 %v2480_v25  ;;  %v855_v25 = vpop.f32.mrf.mxu0 }
 0x2b5   : > { %2291 = vmatprep.subr.bf16.mxu0 %v2618_v36 }
 0x2b6   : > { %2272 = vmatpush3.bf16.msra.mxu1 %v2481_v23  ;;  %v856_v23 = vadd.f32 %v3022_v29, %v855_v25 }
 0x2b7   : > { %2297 = vmatprep.subr.bf16.mxu1 %v2618_v36 }
 0x2b8   : > { %2292 = vmatpush3.bf16.msra.mxu0 %v2482_v26  ;;  %v864_v26 = vadd.f32 %v2216_v16, %v3022_v29 }
 0x2b9   : > { %2274 = vmatmul.mubr.bf16.vlgmr.msra.gmra.mxu1 %v901_v30  ;;  %2317 = vmatprep.subr.bf16.mxu0 %v2618_v36  ;;  %v879_v30 = vmax.f32 %v853_v21, 0.0 }
 0x2ba   : > { %2298 = vmatpush3.bf16.msra.mxu1 %v2483_v28  ;;  %2313 = vmatprep.mubr.msk.bf16.mxu1 %vm2619_vm1, %v2618_v36  ;;  %v880_v28 = vmax.f32 %v856_v23, 0.0 }
 0x2bb   : > { %2294 = vmatmul.mubr.bf16.vlgmr.msra.gmra.mxu0 %v902_v39  ;;  %2299 = vmatprep.subr.bf16.mxu1 %v2618_v36  ;;  %v2513_v39 = vld [vmem:[#allocation2 + $0x180] sm:$0xff]   ;;  %v895_v29 = vadd.f32 %v879_v30, %v2995_v43 }
 0x2bc   : > { %2318 = vmatpush3.bf16.msra.mxu0 %v2484_v31  ;;  %2333 = vmatprep.mubr.msk.bf16.mxu0 %vm2619_vm1, %v2618_v36  ;;  %v882_v31 = vmax.f32 %v864_v26, 0.0  ;;  %v896_v35 = vadd.f32 %v880_v28, %v2999_v50 }
 0x2bd   : > { %2319 = vmatprep.subr.bf16.mxu0 %v2618_v36 }
 0x2be   : > { %2300 = vmatpush3.bf16.msra.mxu1 %v2485_v32  ;;  %v881_v32 = vmax.f32 %v861_v24, 0.0 }
 0x2bf   : > { %2301 = vmatprep.subr.bf16.mxu1 %v2618_v36 }
 0x2c0   : > { %2320 = vmatpush3.bf16.msra.mxu0 %v2486_v38  ;;  %v2514_v38 = vld [vmem:[#allocation2 + $0x1c0] sm:$0xff]   ;;  %v897_v45 = vadd.f32 %v881_v32, %v3003_v42 }
 0x2c1   : > { %2321 = vmatprep.subr.bf16.mxu0 %v2618_v36 }
 0x2c2   : > { %2302 = vmatpush3.bf16.msra.mxu1 %v2487_v41  ;;  %v898_v41 = vadd.f32 %v882_v31, %v2990_v48 }
 0x2c3   : > { %2303 = vmatprep.subr.bf16.mxu1 %v2618_v36 }
 0x2c4   : > { %2322 = vmatpush3.bf16.msra.mxu0 %v2488_v52  ;;  %v905_v52 = vpack.c.bf16 %v896_v35, %v895_v29 }
 0x2c5   : > { %2323 = vmatprep.subr.bf16.mxu0 %v2618_v36 }
 0x2c6   : > { %2304 = vmatpush3.bf16.msra.mxu1 %v2489_v33  ;;  %v906_v33 = vpack.c.bf16 %v898_v41, %v897_v45 }
 0x2c7   : > { %2305 = vmatprep.subr.bf16.mxu1 %v2618_v36 }
 0x2c8   : > { %2324 = vmatpush3.bf16.msra.mxu0 %v2490_v37 }
 0x2c9   : > { %2325 = vmatprep.subr.bf16.mxu0 %v2618_v36 }
 0x2ca   : > { %2306 = vmatpush3.bf16.msra.mxu1 %v2491_v40 }
 0x2cb   : > { %2307 = vmatprep.subr.bf16.mxu1 %v2618_v36 }
 0x2cc   : > { %2326 = vmatpush3.bf16.msra.mxu0 %v2492_v63 }
 0x2cd   : > { %2327 = vmatprep.subr.bf16.mxu0 %v2618_v36 }
 0x2ce   : > { %2308 = vmatpush3.bf16.msra.mxu1 %v2493_v46 }
 0x2cf   : > { %2309 = vmatprep.subr.bf16.mxu1 %v2618_v36 }
 0x2d0   : > { %2328 = vmatpush3.bf16.msra.mxu0 %v2494_v62 }
 0x2d1   : > { %2329 = vmatprep.subr.bf16.mxu0 %v2618_v36 }
 0x2d2   : > { %2310 = vmatpush3.bf16.msra.mxu1 %v2495_v2 }
 0x2d3   : > { %2311 = vmatprep.subr.bf16.mxu1 %v2618_v36 }
 0x2d4   : > { %2330 = vmatpush3.bf16.msra.mxu0 %v2496_v54 }
 0x2d5   : > { %2331 = vmatprep.subr.bf16.mxu0 %v2618_v36 }
 0x2d6   : > { %2312 = vmatpush3.bf16.msra.mxu1 %v2497_v17 }
 0x2d7   : > { %2337 = vmatprep.subr.bf16.mxu1 %v2618_v36 }
 0x2d8   : > { %2332 = vmatpush3.bf16.msra.mxu0 %v2498_v57 }
 0x2d9   : > { %2314 = vmatmul.mubr.bf16.vlgmr.msra.gmra.mxu1 %v903_v13  ;;  %2357 = vmatprep.subr.bf16.mxu0 %v2618_v36 }
 0x2da   : > { %2338 = vmatpush3.bf16.msra.mxu1 %v2499_v6  ;;  %2353 = vmatprep.mubr.msk.bf16.mxu1 %vm2619_vm1, %v2618_v36 }
 0x2db   : > { %2334 = vmatmul.mubr.bf16.vlgmr.msra.gmra.mxu0 %v904_v5  ;;  %2339 = vmatprep.subr.bf16.mxu1 %v2618_v36 }
 0x2dc   : > { %2358 = vmatpush3.bf16.msra.mxu0 %v2500_v15  ;;  %2373 = vmatprep.mubr.msk.bf16.mxu0 %vm2619_vm1, %v2618_v36 }
 0x2dd   : > { %2359 = vmatprep.subr.bf16.mxu0 %v2618_v36 }
 0x2de   : > { %2340 = vmatpush3.bf16.msra.mxu1 %v2501_v7 }
 0x2df   : > { %2341 = vmatprep.subr.bf16.mxu1 %v2618_v36 }
 0x2e0   : > { %2360 = vmatpush3.bf16.msra.mxu0 %v2502_v3 }
 0x2e1   : > { %2361 = vmatprep.subr.bf16.mxu0 %v2618_v36 }
 0x2e2   : > { %2342 = vmatpush3.bf16.msra.mxu1 %v2503_v8 }
 0x2e3   : > { %2343 = vmatprep.subr.bf16.mxu1 %v2618_v36 }
 0x2e4   : > { %2362 = vmatpush3.bf16.msra.mxu0 %v2504_v20  ;;  %v2012_v20 = vld [vmem:[%s3172_s6] ss:$0 sm:$0xff] }
 0x2e5   : > { %2363 = vmatprep.subr.bf16.mxu0 %v2618_v36 }
 0x2e6   : > { %2344 = vmatpush3.bf16.msra.mxu1 %v2505_v14 }
 0x2e7   : > { %2345 = vmatprep.subr.bf16.mxu1 %v2618_v36 }
 0x2e8   : > { %2364 = vmatpush3.bf16.msra.mxu0 %v2506_v4 }
 0x2e9   : > { %2365 = vmatprep.subr.bf16.mxu0 %v2618_v36 }
 0x2ea   : > { %2346 = vmatpush3.bf16.msra.mxu1 %v2507_v10 }
 0x2eb   : > { %2347 = vmatprep.subr.bf16.mxu1 %v2618_v36 }
 0x2ec   : > { %2366 = vmatpush3.bf16.msra.mxu0 %v2508_v44 }
 0x2ed   : > { %2367 = vmatprep.subr.bf16.mxu0 %v2618_v36 }
 0x2ee   : > { %2348 = vmatpush3.bf16.msra.mxu1 %v2509_v47 }
 0x2ef   : > { %2349 = vmatprep.subr.bf16.mxu1 %v2618_v36 }
 0x2f0   : > { %2368 = vmatpush3.bf16.msra.mxu0 %v2510_v27 }
 0x2f1   : > { %2369 = vmatprep.subr.bf16.mxu0 %v2618_v36 }
 0x2f2   : > { %2350 = vmatpush3.bf16.msra.mxu1 %v2511_v18 }
 0x2f3   : > { %2351 = vmatprep.subr.bf16.mxu1 %v2618_v36 }
 0x2f4   : > { %2370 = vmatpush3.bf16.msra.mxu0 %v2512_v51 }
 0x2f5   : > { %2371 = vmatprep.subr.bf16.mxu0 %v2618_v36 }
 0x2f6   : > { %2352 = vmatpush3.bf16.msra.mxu1 %v2513_v39 }
 0x2f8   : > { %2372 = vmatpush3.bf16.msra.mxu0 %v2514_v38 }
 0x2f9   : > { %2354 = vmatmul.mubr.bf16.vlgmr.msra.gmra.mxu1 %v905_v52 }
 0x2fb   : > { %2374 = vmatmul.mubr.bf16.vlgmr.msra.gmra.mxu0 %v906_v33 }
 0x359   : > { %v1022_v34 = vpop.f32.mrf.mxu1 }
 0x35b   : > { %v2235_v50 = vpop.f32.mrf.mxu1  ;;  %v1111_v37 = vpop.f32.mrf.mxu0 }
 0x35c   : > { %v1112_v40 = vadd.f32 %v1111_v37, %v1022_v34 }
 0x35d   : > { %v1025_v59 = vpop.f32.mrf.mxu1  ;;  %v2255_v63 = vpop.f32.mrf.mxu0 }
 0x35f   : > { %v2236_v46 = vpop.f32.mrf.mxu1  ;;  %v1114_v43 = vpop.f32.mrf.mxu0 }
 0x360   : > { %v1115_v55 = vadd.f32 %v1114_v43, %v1025_v59 }
 0x361   : > { %v2256_v48 = vpop.f32.mrf.mxu0 }
 0x379   : > { %v1217_v62 = vpop.f32.mrf.mxu1 }
 0x37a   : > { %v1224_v1 = vadd.f32 %v1217_v62, %v1112_v40 }
 0x37b   : > { %v2275_v36 = vpop.f32.mrf.mxu1  ;;  %v1325_v49 = vpop.f32.mrf.mxu0 }
 0x37c   : > { %v1332_v6 = vadd.f32 %v1325_v49, %v1224_v1 }
 0x37d   : > { %v1220_v0 = vpop.f32.mrf.mxu1  ;;  %v2295_v42 = vpop.f32.mrf.mxu0 }
 0x37e   : > { %v1225_v9 = vadd.f32 %v1220_v0, %v1115_v55 }
 0x37f   : > { %v2276_v2 = vpop.f32.mrf.mxu1  ;;  %v1328_v53 = vpop.f32.mrf.mxu0 }
 0x380   : > { %v1333_v15 = vadd.f32 %v1328_v53, %v1225_v9 }
 0x381   : > { %v2296_v60 = vpop.f32.mrf.mxu0 }
 0x399   : > { %v1433_v54 = vpop.f32.mrf.mxu1 }
 0x39a   : > { %v1440_v13 = vadd.f32 %v1433_v54, %v1332_v6 }
 0x39b   : > { %v2315_v22 = vpop.f32.mrf.mxu1  ;;  %v1541_v11 = vpop.f32.mrf.mxu0 }
 0x39c   : > { %v1548_v5 = vadd.f32 %v1541_v11, %v1440_v13 }
 0x39d   : > { %v1436_v17 = vpop.f32.mrf.mxu1  ;;  %v2335_v19 = vpop.f32.mrf.mxu0 }
 0x39e   : > { %v1441_v7 = vadd.f32 %v1436_v17, %v1333_v15 }
 0x39f   : > { %v2316_v56 = vpop.f32.mrf.mxu1  ;;  %v1544_v57 = vpop.f32.mrf.mxu0 }
 0x3a0   : > { %v1549_v14 = vadd.f32 %v1544_v57, %v1441_v7 }
 0x3a1   : > { %v2336_v58 = vpop.f32.mrf.mxu0 }
 0x3b9   : > { %v1649_v61 = vpop.f32.mrf.mxu1 }
 0x3ba   : > { %v1656_v3 = vadd.f32 %v1649_v61, %v1548_v5 }
 0x3bb   : > { %v2355_v8 = vpop.f32.mrf.mxu1  ;;  %v1757_v12 = vpop.f32.mrf.mxu0 }
 0x3bc   : > { %v1764_v16 = vadd.f32 %v1757_v12, %v1656_v3 }
 0x3bd   : > { %v1652_v4 = vpop.f32.mrf.mxu1  ;;  %v2375_v10 = vpop.f32.mrf.mxu0 }
 0x3be   : > { %v1773_v25 = vadd.f32 %v2012_v20, %v1764_v16  ;;  %v1657_v44 = vadd.f32 %v1652_v4, %v1549_v14 }
 0x3bf   : > { %v2356_v47 = vpop.f32.mrf.mxu1  ;;  %v1760_v23 = vpop.f32.mrf.mxu0 }
 0x3c0   : > { %v1777_v27 = vmin.f32 %v1773_v25, 20.0  ;;  %v1765_v21 = vadd.f32 %v1760_v23, %v1657_v44  ;;  %vm1775_vm3 = vcmp.gt.f32.partialorder %v1773_v25, 20.0 }
 0x3c1   : > { %v2376_v26 = vpop.f32.mrf.mxu0 }
 0x3c2   : > { %v1779_v18 = vmul.f32 1.442695, %v1777_v27  ;;  %v1774_v24 = vadd.f32 %v2012_v20, %v1765_v21 }
 0x3c4   : > { %2515 = vpow2.f32 %v1779_v18  ;;  %v1778_v28 = vmin.f32 %v1774_v24, 20.0  ;;  %vm1776_vm5 = vcmp.gt.f32.partialorder %v1774_v24, 20.0 }
 0x3c6   : > { %v1781_v51 = vmul.f32 1.442695, %v1778_v28 }
 0x3c8   : > { %2517 = vpow2.f32 %v1781_v51 }
 0x3d1   : > { %v2516_v30 = vpop.eup %2515 }
 0x3d2   : > { %v1783_v31 = vadd.f32 1.0, %v2516_v30  ;;  %v1786_v35 = vmul.f32 -0.5, %v2516_v30  ;;  %v1789_v41 = vand.u32 2147483647, %v2516_v30 }
 0x3d4   : > { %2519 = vlog2.f32 %v1783_v31  ;;  %v1787_v38 = vadd.f32 1.0, %v1786_v35  ;;  %vm1790_vm2 = vcmp.lt.f32.partialorder %v1789_v41, 0.0004427343 }
 0x3d5   : > { %v2518_v39 = vpop.eup %2517 }
 0x3d6   : > { %v1792_v32 = vadd.f32 1.0, %v2518_v39  ;;  %v1795_v29 = vmul.f32 -0.5, %v2518_v39  ;;  %v1788_v33 = vmul.f32 %v2516_v30, %v1787_v38  ;;  %v1798_v50 = vand.u32 2147483647, %v2518_v39 }
 0x3d8   : > { %2521 = vlog2.f32 %v1792_v32  ;;  %v1796_v34 = vadd.f32 1.0, %v1795_v29  ;;  %vm1799_vm4 = vcmp.lt.f32.partialorder %v1798_v50, 0.0004427343 }
 0x3da   : > { %v1797_v46 = vmul.f32 %v2518_v39, %v1796_v34 }
 0x3e1   : > { %v2520_v45 = vpop.eup %2519 }
 0x3e2   : > { %v1785_v52 = vmul.f32 0.6931472, %v2520_v45 }
 0x3e4   : > { %v1791_v37 = vsel %vm1790_vm2, %v1788_v33, %v1785_v52 }
 0x3e5   : > { %v2522_v40 = vpop.eup %2521  ;;  %v1801_v59 = vsel %vm1775_vm3, %v1773_v25, %v1791_v37 }
 0x3e6   : > { %1803 = vst [vmem:[%s287_s8] sm:$0xff] %v1801_v59  ;;  %v1794_v63 = vmul.f32 0.6931472, %v2522_v40 }
 0x3e8   : > { %v1800_v43 = vsel %vm1799_vm4, %v1797_v46, %v1794_v63 }
 0x3e9   : > { %v1802_v55 = vsel %vm1776_vm5, %v1774_v24, %v1800_v43 }
 0x3ea   : > { %1804 = vst [vmem:[%s287_s8 + $0x8] sm:$0xff] %v1802_v55 }
 0x3eb   : > { %2562 = shalt.err (!%p2559_p0)
}
 0x3ec   : > { %s2563_s14 = scalar_lea.hbm %s3124_s21, 256  ;;  %s2567_s16 = scalar_lea.hbm %s3173_s7, 512 }
 0x3ed   : > { %p2564_p1 = scmp.ne.s32.totalorder %s3124_s21, %s2563_s14  ;;  %p2568_p4 = scmp.lt.s32.totalorder %s3124_s21, %s3173_s7 }
 0x3ee   : > { %p2569_p7 = scmp.lt.s32.totalorder %s2567_s16, %s2563_s14 }
 0x3ef   : > { %p2565_p2 = pnand %p2564_p1, %p2701_p5 }
 0x3f0   : > { %p2570_p8 = por %p2569_p7, %p2568_p4 }
 0x3f1   : > { %p2566_p3 = pneg %p2565_p2 }
 0x3f3   : > { %p2571_p6 = pnand %p2570_p8, %p2566_p3 }
 0x3f5   : > { %2574 = shalt.err (!%p2571_p6)
}
 0x3f6   : > { %s2621_s19 = smov 128   ;;  %s2622_s20 = smov 8  }
 0x3f7   : > { %2381 = dma.vmem_to_hbm [thread:$0]  (%p2701_p5), %s3119_s17, 256, %s3124_s21, %s3126_s28, %s2621_s19, %s2621_s19, %s2622_s20  }
 0x3f8 PF: > { %p2393_p9 = scmp.ge.s32.totalorder %s2613_s27, 2  ;;  %s1834_s22 = sand.u32 1, %s2601_s24  }
 0x3f9   : > { %p3177_p10 = scmp.ne.s32.totalorder %s3175_s12, 0  ;;  %s1835_s23 = scalar_lea.sflag [#allocation4], %s1834_s22 }
 0x3fb   : > { %p2388_p11 = pnand %p2393_p9, %p3177_p10 }
 0x3fd   : > { %p2389_p12 = pneg %p2388_p11 }
 0x3ff   : > { %2596 = dma.done.wait (%p2389_p12), %s1835_s23, 256  }
 0x400   : > { %2598 = vsyncadd (%p2389_p12), %s1835_s23, 4294967040  ;;  %p18_p13 = scmp.ge.s32.totalorder %s2688_s30, 4   ;;  %s3178_s24 = smov %s2605_s25 }
 0x401   : > { %s3179_s25 = smov %s2609_s26  ;;  %s3180_s26 = smov %s2699_s10 }
 0x402   : > { %s3181_s27 = smov %s2688_s30  ;;  %20 = sbr.rel (!%p18_p13) target bundleno = 4 (0x4), region = 97 }
 0x407   :  { %1840 = vsyncpa [#allocation3], 1 }
 0x408   :  { %1842 = vsyncpa [#allocation3 + $0x1], 1 }
 0x409   :  { %1843 = vsyncpa [#allocation4], 1 }
 0x40a   :  { %1845 = vsyncpa [#allocation4 + $0x1], 1 }

</bundles_post_ra>
